<compile_context>
chip_gen: v5e
topology: v5e:2x2
jax: 0.10.0
libtpu: 0.0.40
codegen_flags: <defaults>
</compile_context>

<pallas_src>
import jax
import jax.numpy as jnp
from jax.experimental import pallas as pl
from jax.experimental.pallas import tpu as pltpu


# ---------------------------------------------------------------------------
# kernel factory
# ---------------------------------------------------------------------------
def make_gcn_kernel(layers, mem_dim, head_dim, block_b, num_node,
                    matmul_dtype=jnp.float32):
    n = num_node
    f32 = jnp.float32

    def mm(a, b):
        # 2-D row-wise linear on the MXU (operands optionally bf16, f32 acc)
        return jnp.dot(a.astype(matmul_dtype), b.astype(matmul_dtype),
                       preferred_element_type=f32)

    def bmm(eq, a, b):
        # batched (per batch element) matmul
        return jnp.einsum(eq, a.astype(matmul_dtype), b.astype(matmul_dtype),
                          preferred_element_type=f32)

    def kernel(*refs):
        # refs: x, adj, wnode_t, bnode, (w_t_i, b_i)*layers, wout_t, bout,
        #       out_ref, buf_ref (VMEM scratch)
        x_ref, adj_ref, wnode_ref, bnode_ref = refs[:4]
        layer_refs = refs[4:4 + 2 * layers]
        wout_ref, bout_ref, out_ref, buf_ref = refs[4 + 2 * layers:]

        x3 = x_ref[...].astype(f32)          # (BB, N, D)
        adj = adj_ref[...].astype(f32)       # (BB, N, N)
        wnode_t = wnode_ref[...]             # (N, N)  (pre-transposed)
        bnode = bnode_ref[...]               # (1, N)

        rows = block_b * n
        xf = x3.reshape(rows, mem_dim)       # flattened rows for linears

        # loop-invariant denom and its reciprocal (computed once, EUP)
        denom = jnp.sum(adj, axis=2, keepdims=True)            # (BB, N, 1)
        inv_denom = pl.reciprocal(denom, approx=True)

        # concat scratch: [x | g_0 | ... | g_{L-1}] on the lane dim
        buf_ref[:, 0:mem_dim] = xf

        # running Gram matrix of the virtual concatenation
        gram = bmm("bnd,bmd->bnm", x3, x3)                      # (BB, N, N)

        a = adj
        g_prev = None
        for i in range(layers):
            if i > 0:
                gram = gram + bmm("bnd,bmd->bnm", g_prev, g_prev)

            w_t = layer_refs[2 * i][...]                        # (width, H)
            b = layer_refs[2 * i + 1][...]                      # (1, H)
            width = mem_dim + i * head_dim

            # relative_score = softmax(linear_node(outputs @ outputs.T), -1)
            score = mm(gram.reshape(rows, n), wnode_t) + bnode  # (rows, N)
            score = score - jnp.max(score, axis=-1, keepdims=True)
            e = jnp.exp(score)
            score = e * pl.reciprocal(jnp.sum(e, axis=-1, keepdims=True),
                                      approx=True)
            score3 = score.reshape(block_b, n, n)

            # adj <- adj @ relative_score
            a = bmm("bnm,bmk->bnk", a, score3)

            # ow = outputs @ W_i^T : one matmul over the whole concat buffer
            outputs_f = buf_ref[:, 0:width]                     # (rows, width)
            ow = mm(outputs_f, w_t).reshape(block_b, n, head_dim)

            # AxW = W_i(adj@outputs) + W_i(outputs); bias added twice as in torch
            axw = bmm("bnm,bmh->bnh", a, ow) + ow + (b + b)
            g = jnp.maximum(axw * inv_denom, 0.0)               # relu; dropout=id

            buf_ref[:, mem_dim + i * head_dim:
                       mem_dim + (i + 1) * head_dim] = g.reshape(rows, head_dim)
            g_prev = g

        # out = linear_output(cat(g_0..g_{L-1}) + gcn_inputs)
        wout_t = wout_ref[...]                                  # (D, D)
        bout = bout_ref[...]                                    # (1, D)
        gsum = buf_ref[:, mem_dim:mem_dim + layers * head_dim]  # (rows, D)
        out = mm(gsum + xf, wout_t) + bout
        out_ref[...] = out.reshape(block_b, n, mem_dim).astype(out_ref.dtype)

    return kernel


# ---------------------------------------------------------------------------
# wrapper
# ---------------------------------------------------------------------------
def inter_sentence_gcn(x, adj, params, *, layers, mem_dim, head_dim,
                       block_b=None, matmul_dtype=jnp.float32):
    B, N, D = x.shape
    assert D == mem_dim and adj.shape == (B, N, N)
    # the residual add in the torch module requires this
    assert layers * head_dim == mem_dim

    if block_b is None:
        # fill the MXU M-dim (target ~128 rows/step) with a divisor of B; if B
        # is even keep >=2 grid steps so the parallel batch axis can feed both
        # v7x TensorCores.
        block_b = min(B, max(1, 128 // max(N, 1)))
        while B % block_b:
            block_b -= 1
        if B >= 2 and block_b == B and B % 2 == 0:
            block_b = B // 2
    assert B % block_b == 0
    grid = (B // block_b,)

    inputs = [x, adj, params["wnode_t"], params["bnode"]]
    in_specs = [
        pl.BlockSpec((block_b, N, D), lambda b: (b, 0, 0)),
        pl.BlockSpec((block_b, N, N), lambda b: (b, 0, 0)),
        pl.BlockSpec((N, N), lambda b: (0, 0)),
        pl.BlockSpec((1, N), lambda b: (0, 0)),
    ]
    for i in range(layers):
        w_t = params["w_t"][i]
        b_i = params["b"][i]
        inputs += [w_t, b_i]
        in_specs += [
            pl.BlockSpec(tuple(w_t.shape), lambda b: (0, 0)),
            pl.BlockSpec(tuple(b_i.shape), lambda b: (0, 0)),
        ]
    inputs += [params["wout_t"], params["bout"]]
    in_specs += [
        pl.BlockSpec((D, D), lambda b: (0, 0)),
        pl.BlockSpec((1, D), lambda b: (0, 0)),
    ]

    kernel = make_gcn_kernel(layers, mem_dim, head_dim, block_b, N,
                             matmul_dtype=matmul_dtype)
    total_dim = mem_dim + layers * head_dim

    # NOTE: weights are grid-invariant (index_map always (0,0)); for large N on
    # v7x (64 MiB VMEM) consider pipeline_mode=pl.Buffered(1) on them and an
    # explicit vmem_limit_bytes.  At larger D (>=128) the output store becomes
    # lane-dense automatically; at D=32 the masked-store tail is negligible.
    return pl.pallas_call(
        kernel,
        out_shape=jax.ShapeDtypeStruct((B, N, D), jnp.float32),
        grid=grid,
        in_specs=in_specs,
        out_specs=pl.BlockSpec((block_b, N, D), lambda b: (b, 0, 0)),
        scratch_shapes=[pltpu.VMEM((block_b * N, total_dim), jnp.float32)],
        compiler_params=pltpu.CompilerParams(
            dimension_semantics=("parallel",)),
    )(*inputs)


# ---------------------------------------------------------------------------
# deterministic parameter init (mimics weight_norm(dim=None) resolution)
# ---------------------------------------------------------------------------
def _weight_norm_eff(key, out_dim, in_dim):
    kv, kg, kb = jax.random.split(key, 3)
    v = jax.random.normal(kv, (out_dim, in_dim), jnp.float32) * 0.1
    g = 1.0 + 0.1 * jax.random.normal(kg, (), jnp.float32)
    w_eff = g * v / jnp.sqrt(jnp.sum(v * v))          # dim=None -> Frobenius norm
    b = jax.random.normal(kb, (out_dim,), jnp.float32) * 0.05
    return w_eff, b


def init_params(key, *, mem_dim, layers, head_dim, num_node):
    keys = jax.random.split(key, layers + 2)
    params = {"w_t": [], "b": []}
    for i in range(layers):
        in_dim = mem_dim + head_dim * i
        w, b = _weight_norm_eff(keys[i], head_dim, in_dim)
        params["w_t"].append(w.T)                     # (in_dim, head_dim)
        params["b"].append(b[None, :])                # (1, head_dim)
    w_out, b_out = _weight_norm_eff(keys[layers], mem_dim, mem_dim)
    params["wout_t"] = w_out.T                        # (mem_dim, mem_dim)
    params["bout"] = b_out[None, :]                   # (1, mem_dim)
    kn_w, kn_b = jax.random.split(keys[layers + 1])
    w_node = jax.random.normal(kn_w, (num_node, num_node), jnp.float32) * (
        1.0 / jnp.sqrt(num_node))
    b_node = jax.random.normal(kn_b, (num_node,), jnp.float32) * 0.05
    params["wnode_t"] = w_node.T                      # (N, N)
    params["bnode"] = b_node[None, :]                 # (1, N)
    return params


# ---------------------------------------------------------------------------
# pure-JAX reference (mirrors the PyTorch forward, dropout = identity)
# ---------------------------------------------------------------------------
def gcn_reference(x, adj, params, *, layers, mem_dim, head_dim):
    denom = jnp.sum(adj, axis=2, keepdims=True)
    outputs = x
    a = adj
    cache = [outputs]
    outs = []
    for i in range(layers):
        score = jnp.einsum("bnd,bmd->bnm", outputs, outputs)
        score = score @ params["wnode_t"] + params["bnode"][0]
        score = jax.nn.softmax(score, axis=-1)
        a = jnp.einsum("bnm,bmk->bnk", a, score)
        Ax = jnp.einsum("bnm,bmd->bnd", a, outputs)
        w_t = params["w_t"][i]
        b = params["b"][i][0]
        AxW = (Ax @ w_t + b) + (outputs @ w_t + b)
        AxW = AxW / denom
        g = jax.nn.relu(AxW)
        cache.append(g)
        outputs = jnp.concatenate(cache, axis=2)
        outs.append(g)
    gcn_out = jnp.concatenate(outs, axis=2) + x
    return gcn_out @ params["wout_t"] + params["bout"][0]


# ---------------------------------------------------------------------------
if __name__ == "__main__":
    B, N = 4, 8                 # batch, number_node
    MEM_DIM, LAYERS = 32, 4
    HEAD_DIM = MEM_DIM // LAYERS

    key = jax.random.PRNGKey(0)
    kx, ka, kp = jax.random.split(key, 3)
    x = jax.random.normal(kx, (B, N, MEM_DIM), jnp.float32)
    adj = jax.random.uniform(ka, (B, N, N), jnp.float32, minval=0.1, maxval=1.0)
    params = init_params(kp, mem_dim=MEM_DIM, layers=LAYERS,
                         head_dim=HEAD_DIM, num_node=N)

    # matmul_dtype=jnp.bfloat16 is recommended for v6e/v7x production use;
    # the demo keeps f32 operands so results match the f32 reference tightly.
    out = inter_sentence_gcn(x, adj, params, layers=LAYERS,
                             mem_dim=MEM_DIM, head_dim=HEAD_DIM)
    out = jax.block_until_ready(out)

    ref = gcn_reference(x, adj, params, layers=LAYERS,
                        mem_dim=MEM_DIM, head_dim=HEAD_DIM)
    ref = jax.block_until_ready(ref)

    assert out.shape == (B, N, MEM_DIM)
    max_err = float(jnp.max(jnp.abs(out - ref)))
    assert jnp.allclose(out, ref, atol=2e-3, rtol=2e-3), max_err
    print("KERNEL_OK")
</pallas_src>

<mosaic_0001>
module attributes {stable_mosaic.version = 11 : i64} {
  func.func @kernel(%arg0: i32, %arg1: memref<2x8x32xf32, #tpu.memory_space<vmem>>, %arg2: memref<2x8x8xf32, #tpu.memory_space<vmem>>, %arg3: memref<8x8xf32, #tpu.memory_space<vmem>>, %arg4: memref<1x8xf32, #tpu.memory_space<vmem>>, %arg5: memref<32x8xf32, #tpu.memory_space<vmem>>, %arg6: memref<1x8xf32, #tpu.memory_space<vmem>>, %arg7: memref<40x8xf32, #tpu.memory_space<vmem>>, %arg8: memref<1x8xf32, #tpu.memory_space<vmem>>, %arg9: memref<48x8xf32, #tpu.memory_space<vmem>>, %arg10: memref<1x8xf32, #tpu.memory_space<vmem>>, %arg11: memref<56x8xf32, #tpu.memory_space<vmem>>, %arg12: memref<1x8xf32, #tpu.memory_space<vmem>>, %arg13: memref<32x32xf32, #tpu.memory_space<vmem>>, %arg14: memref<1x32xf32, #tpu.memory_space<vmem>>, %arg15: memref<2x8x32xf32, #tpu.memory_space<vmem>>, %arg16: memref<16x64xf32, #tpu.memory_space<vmem>>) attributes {dimension_semantics = [#tpu.dimension_semantics<parallel>], iteration_bounds = array<i64: 2>, scalar_prefetch = 0 : i64, scratch_operands = 1 : i64, tpu.core_type = #tpu.core_type<tc>, window_params = [{transform_indices = @transform_0, window_bounds = array<i64: 2, 8, 32>}, {transform_indices = @transform_1, window_bounds = array<i64: 2, 8, 8>}, {pipeline_mode = #tpu.pipeline_mode<synchronous>, transform_indices = @transform_2, window_bounds = array<i64: 8, 8>}, {pipeline_mode = #tpu.pipeline_mode<synchronous>, transform_indices = @transform_3, window_bounds = array<i64: 1, 8>}, {pipeline_mode = #tpu.pipeline_mode<synchronous>, transform_indices = @transform_4, window_bounds = array<i64: 32, 8>}, {pipeline_mode = #tpu.pipeline_mode<synchronous>, transform_indices = @transform_5, window_bounds = array<i64: 1, 8>}, {pipeline_mode = #tpu.pipeline_mode<synchronous>, transform_indices = @transform_6, window_bounds = array<i64: 40, 8>}, {pipeline_mode = #tpu.pipeline_mode<synchronous>, transform_indices = @transform_7, window_bounds = array<i64: 1, 8>}, {pipeline_mode = #tpu.pipeline_mode<synchronous>, transform_indices = @transform_8, window_bounds = array<i64: 48, 8>}, {pipeline_mode = #tpu.pipeline_mode<synchronous>, transform_indices = @transform_9, window_bounds = array<i64: 1, 8>}, {pipeline_mode = #tpu.pipeline_mode<synchronous>, transform_indices = @transform_10, window_bounds = array<i64: 56, 8>}, {pipeline_mode = #tpu.pipeline_mode<synchronous>, transform_indices = @transform_11, window_bounds = array<i64: 1, 8>}, {pipeline_mode = #tpu.pipeline_mode<synchronous>, transform_indices = @transform_12, window_bounds = array<i64: 32, 32>}, {pipeline_mode = #tpu.pipeline_mode<synchronous>, transform_indices = @transform_13, window_bounds = array<i64: 1, 32>}, {transform_indices = @transform_14, window_bounds = array<i64: 2, 8, 32>}]} {
    %c0 = arith.constant 0 : index
    %c0_0 = arith.constant 0 : index
    %c0_1 = arith.constant 0 : index
    %0 = vector.load %arg1[%c0, %c0_0, %c0_1] : memref<2x8x32xf32, #tpu.memory_space<vmem>>, vector<2x8x32xf32>
    %c0_2 = arith.constant 0 : index
    %c0_3 = arith.constant 0 : index
    %c0_4 = arith.constant 0 : index
    %1 = vector.load %arg2[%c0_2, %c0_3, %c0_4] : memref<2x8x8xf32, #tpu.memory_space<vmem>>, vector<2x8x8xf32>
    %c0_5 = arith.constant 0 : index
    %c0_6 = arith.constant 0 : index
    %2 = vector.load %arg3[%c0_5, %c0_6] : memref<8x8xf32, #tpu.memory_space<vmem>>, vector<8x8xf32>
    %c0_7 = arith.constant 0 : index
    %c0_8 = arith.constant 0 : index
    %3 = vector.load %arg4[%c0_7, %c0_8] : memref<1x8xf32, #tpu.memory_space<vmem>>, vector<1x8xf32>
    %4 = vector.shape_cast %0 : vector<2x8x32xf32> to vector<16x32xf32>
    %cst = arith.constant dense<0.000000e+00> : vector<2x8xf32>
    %5 = vector.multi_reduction <add>, %1, %cst [2] : vector<2x8x8xf32> to vector<2x8xf32>
    %6 = vector.shape_cast %5 : vector<2x8xf32> to vector<2x8x1xf32>
    %7 = tpu.reciprocal %6 {approx = true} : vector<2x8x1xf32> -> vector<2x8x1xf32>
    %c0_9 = arith.constant 0 : index
    %c0_10 = arith.constant 0 : index
    %8 = vector.load %arg16[%c0_9, %c0_10] : memref<16x64xf32, #tpu.memory_space<vmem>>, vector<16x32xf32>
    tpu.vector_store %arg16[%c0_9, %c0_10], %4 {strides = array<i32>} : memref<16x64xf32, #tpu.memory_space<vmem>>, vector<16x32xf32>,
    "tpu.trace_start"() <{level = 10 : i32, message = "bnd,bmd->bnm"}> : () -> ()
    %cst_11 = arith.constant dense<0.000000e+00> : vector<2x8x8xf32>
    %9 = tpu.matmul %0, %0, %cst_11 {dimension_numbers = #tpu.dot_dimension_numbers<[2], [2], [1], [1], [0, 0, 0, 1, 1, 1], [0], [0]>} : vector<2x8x32xf32>, vector<2x8x32xf32>, vector<2x8x8xf32> -> vector<2x8x8xf32>
    "tpu.trace_stop"() : () -> ()
    %c0_12 = arith.constant 0 : index
    %c0_13 = arith.constant 0 : index
    %10 = vector.load %arg5[%c0_12, %c0_13] : memref<32x8xf32, #tpu.memory_space<vmem>>, vector<32x8xf32>
    %c0_14 = arith.constant 0 : index
    %c0_15 = arith.constant 0 : index
    %11 = vector.load %arg6[%c0_14, %c0_15] : memref<1x8xf32, #tpu.memory_space<vmem>>, vector<1x8xf32>
    %12 = vector.shape_cast %9 : vector<2x8x8xf32> to vector<16x8xf32>
    %cst_16 = arith.constant dense<0.000000e+00> : vector<16x8xf32>
    %13 = tpu.matmul %12, %2, %cst_16 {dimension_numbers = #tpu.dot_dimension_numbers<[1], [0], [0], [1], [0, 0, 1, 1], [], []>} : vector<16x8xf32>, vector<8x8xf32>, vector<16x8xf32> -> vector<16x8xf32>
    %14 = vector.broadcast %3 : vector<1x8xf32> to vector<16x8xf32>
    %15 = arith.addf %13, %14 : vector<16x8xf32>
    %cst_17 = arith.constant dense<0xFF800000> : vector<16xf32>
    %16 = vector.multi_reduction <maximumf>, %15, %cst_17 [1] : vector<16x8xf32> to vector<16xf32>
    %17 = vector.shape_cast %16 : vector<16xf32> to vector<16x1xf32>
    %18 = vector.broadcast %17 : vector<16x1xf32> to vector<16x8xf32>
    %19 = arith.subf %15, %18 : vector<16x8xf32>
    %20 = math.exp %19 : vector<16x8xf32>
    %cst_18 = arith.constant dense<0.000000e+00> : vector<16xf32>
    %21 = vector.multi_reduction <add>, %20, %cst_18 [1] : vector<16x8xf32> to vector<16xf32>
    %22 = vector.shape_cast %21 : vector<16xf32> to vector<16x1xf32>
    %23 = tpu.reciprocal %22 {approx = true} : vector<16x1xf32> -> vector<16x1xf32>
    %24 = vector.broadcast %23 : vector<16x1xf32> to vector<16x8xf32>
    %25 = arith.mulf %20, %24 : vector<16x8xf32>
    %26 = vector.shape_cast %25 : vector<16x8xf32> to vector<2x8x8xf32>
    "tpu.trace_start"() <{level = 10 : i32, message = "bnm,bmk->bnk"}> : () -> ()
    %cst_19 = arith.constant dense<0.000000e+00> : vector<2x8x8xf32>
    %27 = tpu.matmul %1, %26, %cst_19 {dimension_numbers = #tpu.dot_dimension_numbers<[2], [1], [1], [2], [0, 0, 0, 1, 1, 2], [0], [0]>} : vector<2x8x8xf32>, vector<2x8x8xf32>, vector<2x8x8xf32> -> vector<2x8x8xf32>
    "tpu.trace_stop"() : () -> ()
    %c0_20 = arith.constant 0 : index
    %c0_21 = arith.constant 0 : index
    %28 = vector.load %arg16[%c0_20, %c0_21] : memref<16x64xf32, #tpu.memory_space<vmem>>, vector<16x32xf32>
    %cst_22 = arith.constant dense<0.000000e+00> : vector<16x8xf32>
    %29 = tpu.matmul %28, %10, %cst_22 {dimension_numbers = #tpu.dot_dimension_numbers<[1], [0], [0], [1], [0, 0, 1, 1], [], []>} : vector<16x32xf32>, vector<32x8xf32>, vector<16x8xf32> -> vector<16x8xf32>
    %30 = vector.shape_cast %29 : vector<16x8xf32> to vector<2x8x8xf32>
    "tpu.trace_start"() <{level = 10 : i32, message = "bnm,bmh->bnh"}> : () -> ()
    %cst_23 = arith.constant dense<0.000000e+00> : vector<2x8x8xf32>
    %31 = tpu.matmul %27, %30, %cst_23 {dimension_numbers = #tpu.dot_dimension_numbers<[2], [1], [1], [2], [0, 0, 0, 1, 1, 2], [0], [0]>} : vector<2x8x8xf32>, vector<2x8x8xf32>, vector<2x8x8xf32> -> vector<2x8x8xf32>
    "tpu.trace_stop"() : () -> ()
    %32 = arith.addf %31, %30 : vector<2x8x8xf32>
    %33 = arith.addf %11, %11 : vector<1x8xf32>
    %34 = vector.shape_cast %33 : vector<1x8xf32> to vector<1x1x8xf32>
    %35 = vector.broadcast %34 : vector<1x1x8xf32> to vector<2x8x8xf32>
    %36 = arith.addf %32, %35 : vector<2x8x8xf32>
    %37 = vector.broadcast %7 : vector<2x8x1xf32> to vector<2x8x8xf32>
    %38 = arith.mulf %36, %37 : vector<2x8x8xf32>
    %cst_24 = arith.constant 0.000000e+00 : f32
    %39 = vector.broadcast %cst_24 : f32 to vector<2x8x8xf32>
    %40 = arith.maximumf %38, %39 : vector<2x8x8xf32>
    %41 = vector.shape_cast %40 : vector<2x8x8xf32> to vector<16x8xf32>
    %c0_25 = arith.constant 0 : index
    %c32 = arith.constant 32 : index
    %42 = vector.load %arg16[%c0_25, %c32] : memref<16x64xf32, #tpu.memory_space<vmem>>, vector<16x8xf32>
    tpu.vector_store %arg16[%c0_25, %c32], %41 {strides = array<i32>} : memref<16x64xf32, #tpu.memory_space<vmem>>, vector<16x8xf32>,
    "tpu.trace_start"() <{level = 10 : i32, message = "bnd,bmd->bnm"}> : () -> ()
    %cst_26 = arith.constant dense<0.000000e+00> : vector<2x8x8xf32>
    %43 = tpu.matmul %40, %40, %cst_26 {dimension_numbers = #tpu.dot_dimension_numbers<[2], [2], [1], [1], [0, 0, 0, 1, 1, 1], [0], [0]>} : vector<2x8x8xf32>, vector<2x8x8xf32>, vector<2x8x8xf32> -> vector<2x8x8xf32>
    "tpu.trace_stop"() : () -> ()
    %44 = arith.addf %9, %43 : vector<2x8x8xf32>
    %c0_27 = arith.constant 0 : index
    %c0_28 = arith.constant 0 : index
    %45 = vector.load %arg7[%c0_27, %c0_28] : memref<40x8xf32, #tpu.memory_space<vmem>>, vector<40x8xf32>
    %c0_29 = arith.constant 0 : index
    %c0_30 = arith.constant 0 : index
    %46 = vector.load %arg8[%c0_29, %c0_30] : memref<1x8xf32, #tpu.memory_space<vmem>>, vector<1x8xf32>
    %47 = vector.shape_cast %44 : vector<2x8x8xf32> to vector<16x8xf32>
    %cst_31 = arith.constant dense<0.000000e+00> : vector<16x8xf32>
    %48 = tpu.matmul %47, %2, %cst_31 {dimension_numbers = #tpu.dot_dimension_numbers<[1], [0], [0], [1], [0, 0, 1, 1], [], []>} : vector<16x8xf32>, vector<8x8xf32>, vector<16x8xf32> -> vector<16x8xf32>
    %49 = vector.broadcast %3 : vector<1x8xf32> to vector<16x8xf32>
    %50 = arith.addf %48, %49 : vector<16x8xf32>
    %cst_32 = arith.constant dense<0xFF800000> : vector<16xf32>
    %51 = vector.multi_reduction <maximumf>, %50, %cst_32 [1] : vector<16x8xf32> to vector<16xf32>
    %52 = vector.shape_cast %51 : vector<16xf32> to vector<16x1xf32>
    %53 = vector.broadcast %52 : vector<16x1xf32> to vector<16x8xf32>
    %54 = arith.subf %50, %53 : vector<16x8xf32>
    %55 = math.exp %54 : vector<16x8xf32>
    %cst_33 = arith.constant dense<0.000000e+00> : vector<16xf32>
    %56 = vector.multi_reduction <add>, %55, %cst_33 [1] : vector<16x8xf32> to vector<16xf32>
    %57 = vector.shape_cast %56 : vector<16xf32> to vector<16x1xf32>
    %58 = tpu.reciprocal %57 {approx = true} : vector<16x1xf32> -> vector<16x1xf32>
    %59 = vector.broadcast %58 : vector<16x1xf32> to vector<16x8xf32>
    %60 = arith.mulf %55, %59 : vector<16x8xf32>
    %61 = vector.shape_cast %60 : vector<16x8xf32> to vector<2x8x8xf32>
    "tpu.trace_start"() <{level = 10 : i32, message = "bnm,bmk->bnk"}> : () -> ()
    %cst_34 = arith.constant dense<0.000000e+00> : vector<2x8x8xf32>
    %62 = tpu.matmul %27, %61, %cst_34 {dimension_numbers = #tpu.dot_dimension_numbers<[2], [1], [1], [2], [0, 0, 0, 1, 1, 2], [0], [0]>} : vector<2x8x8xf32>, vector<2x8x8xf32>, vector<2x8x8xf32> -> vector<2x8x8xf32>
    "tpu.trace_stop"() : () -> ()
    %c0_35 = arith.constant 0 : index
    %c0_36 = arith.constant 0 : index
    %63 = vector.load %arg16[%c0_35, %c0_36] : memref<16x64xf32, #tpu.memory_space<vmem>>, vector<16x40xf32>
    %cst_37 = arith.constant dense<0.000000e+00> : vector<16x8xf32>
    %64 = tpu.matmul %63, %45, %cst_37 {dimension_numbers = #tpu.dot_dimension_numbers<[1], [0], [0], [1], [0, 0, 1, 1], [], []>} : vector<16x40xf32>, vector<40x8xf32>, vector<16x8xf32> -> vector<16x8xf32>
    %65 = vector.shape_cast %64 : vector<16x8xf32> to vector<2x8x8xf32>
    "tpu.trace_start"() <{level = 10 : i32, message = "bnm,bmh->bnh"}> : () -> ()
    %cst_38 = arith.constant dense<0.000000e+00> : vector<2x8x8xf32>
    %66 = tpu.matmul %62, %65, %cst_38 {dimension_numbers = #tpu.dot_dimension_numbers<[2], [1], [1], [2], [0, 0, 0, 1, 1, 2], [0], [0]>} : vector<2x8x8xf32>, vector<2x8x8xf32>, vector<2x8x8xf32> -> vector<2x8x8xf32>
    "tpu.trace_stop"() : () -> ()
    %67 = arith.addf %66, %65 : vector<2x8x8xf32>
    %68 = arith.addf %46, %46 : vector<1x8xf32>
    %69 = vector.shape_cast %68 : vector<1x8xf32> to vector<1x1x8xf32>
    %70 = vector.broadcast %69 : vector<1x1x8xf32> to vector<2x8x8xf32>
    %71 = arith.addf %67, %70 : vector<2x8x8xf32>
    %72 = vector.broadcast %7 : vector<2x8x1xf32> to vector<2x8x8xf32>
    %73 = arith.mulf %71, %72 : vector<2x8x8xf32>
    %cst_39 = arith.constant 0.000000e+00 : f32
    %74 = vector.broadcast %cst_39 : f32 to vector<2x8x8xf32>
    %75 = arith.maximumf %73, %74 : vector<2x8x8xf32>
    %76 = vector.shape_cast %75 : vector<2x8x8xf32> to vector<16x8xf32>
    %c0_40 = arith.constant 0 : index
    %c40 = arith.constant 40 : index
    %77 = vector.load %arg16[%c0_40, %c40] : memref<16x64xf32, #tpu.memory_space<vmem>>, vector<16x8xf32>
    tpu.vector_store %arg16[%c0_40, %c40], %76 {strides = array<i32>} : memref<16x64xf32, #tpu.memory_space<vmem>>, vector<16x8xf32>,
    "tpu.trace_start"() <{level = 10 : i32, message = "bnd,bmd->bnm"}> : () -> ()
    %cst_41 = arith.constant dense<0.000000e+00> : vector<2x8x8xf32>
    %78 = tpu.matmul %75, %75, %cst_41 {dimension_numbers = #tpu.dot_dimension_numbers<[2], [2], [1], [1], [0, 0, 0, 1, 1, 1], [0], [0]>} : vector<2x8x8xf32>, vector<2x8x8xf32>, vector<2x8x8xf32> -> vector<2x8x8xf32>
    "tpu.trace_stop"() : () -> ()
    %79 = arith.addf %44, %78 : vector<2x8x8xf32>
    %c0_42 = arith.constant 0 : index
    %c0_43 = arith.constant 0 : index
    %80 = vector.load %arg9[%c0_42, %c0_43] : memref<48x8xf32, #tpu.memory_space<vmem>>, vector<48x8xf32>
    %c0_44 = arith.constant 0 : index
    %c0_45 = arith.constant 0 : index
    %81 = vector.load %arg10[%c0_44, %c0_45] : memref<1x8xf32, #tpu.memory_space<vmem>>, vector<1x8xf32>
    %82 = vector.shape_cast %79 : vector<2x8x8xf32> to vector<16x8xf32>
    %cst_46 = arith.constant dense<0.000000e+00> : vector<16x8xf32>
    %83 = tpu.matmul %82, %2, %cst_46 {dimension_numbers = #tpu.dot_dimension_numbers<[1], [0], [0], [1], [0, 0, 1, 1], [], []>} : vector<16x8xf32>, vector<8x8xf32>, vector<16x8xf32> -> vector<16x8xf32>
    %84 = vector.broadcast %3 : vector<1x8xf32> to vector<16x8xf32>
    %85 = arith.addf %83, %84 : vector<16x8xf32>
    %cst_47 = arith.constant dense<0xFF800000> : vector<16xf32>
    %86 = vector.multi_reduction <maximumf>, %85, %cst_47 [1] : vector<16x8xf32> to vector<16xf32>
    %87 = vector.shape_cast %86 : vector<16xf32> to vector<16x1xf32>
    %88 = vector.broadcast %87 : vector<16x1xf32> to vector<16x8xf32>
    %89 = arith.subf %85, %88 : vector<16x8xf32>
    %90 = math.exp %89 : vector<16x8xf32>
    %cst_48 = arith.constant dense<0.000000e+00> : vector<16xf32>
    %91 = vector.multi_reduction <add>, %90, %cst_48 [1] : vector<16x8xf32> to vector<16xf32>
    %92 = vector.shape_cast %91 : vector<16xf32> to vector<16x1xf32>
    %93 = tpu.reciprocal %92 {approx = true} : vector<16x1xf32> -> vector<16x1xf32>
    %94 = vector.broadcast %93 : vector<16x1xf32> to vector<16x8xf32>
    %95 = arith.mulf %90, %94 : vector<16x8xf32>
    %96 = vector.shape_cast %95 : vector<16x8xf32> to vector<2x8x8xf32>
    "tpu.trace_start"() <{level = 10 : i32, message = "bnm,bmk->bnk"}> : () -> ()
    %cst_49 = arith.constant dense<0.000000e+00> : vector<2x8x8xf32>
    %97 = tpu.matmul %62, %96, %cst_49 {dimension_numbers = #tpu.dot_dimension_numbers<[2], [1], [1], [2], [0, 0, 0, 1, 1, 2], [0], [0]>} : vector<2x8x8xf32>, vector<2x8x8xf32>, vector<2x8x8xf32> -> vector<2x8x8xf32>
    "tpu.trace_stop"() : () -> ()
    %c0_50 = arith.constant 0 : index
    %c0_51 = arith.constant 0 : index
    %98 = vector.load %arg16[%c0_50, %c0_51] : memref<16x64xf32, #tpu.memory_space<vmem>>, vector<16x48xf32>
    %cst_52 = arith.constant dense<0.000000e+00> : vector<16x8xf32>
    %99 = tpu.matmul %98, %80, %cst_52 {dimension_numbers = #tpu.dot_dimension_numbers<[1], [0], [0], [1], [0, 0, 1, 1], [], []>} : vector<16x48xf32>, vector<48x8xf32>, vector<16x8xf32> -> vector<16x8xf32>
    %100 = vector.shape_cast %99 : vector<16x8xf32> to vector<2x8x8xf32>
    "tpu.trace_start"() <{level = 10 : i32, message = "bnm,bmh->bnh"}> : () -> ()
    %cst_53 = arith.constant dense<0.000000e+00> : vector<2x8x8xf32>
    %101 = tpu.matmul %97, %100, %cst_53 {dimension_numbers = #tpu.dot_dimension_numbers<[2], [1], [1], [2], [0, 0, 0, 1, 1, 2], [0], [0]>} : vector<2x8x8xf32>, vector<2x8x8xf32>, vector<2x8x8xf32> -> vector<2x8x8xf32>
    "tpu.trace_stop"() : () -> ()
    %102 = arith.addf %101, %100 : vector<2x8x8xf32>
    %103 = arith.addf %81, %81 : vector<1x8xf32>
    %104 = vector.shape_cast %103 : vector<1x8xf32> to vector<1x1x8xf32>
    %105 = vector.broadcast %104 : vector<1x1x8xf32> to vector<2x8x8xf32>
    %106 = arith.addf %102, %105 : vector<2x8x8xf32>
    %107 = vector.broadcast %7 : vector<2x8x1xf32> to vector<2x8x8xf32>
    %108 = arith.mulf %106, %107 : vector<2x8x8xf32>
    %cst_54 = arith.constant 0.000000e+00 : f32
    %109 = vector.broadcast %cst_54 : f32 to vector<2x8x8xf32>
    %110 = arith.maximumf %108, %109 : vector<2x8x8xf32>
    %111 = vector.shape_cast %110 : vector<2x8x8xf32> to vector<16x8xf32>
    %c0_55 = arith.constant 0 : index
    %c48 = arith.constant 48 : index
    %112 = vector.load %arg16[%c0_55, %c48] : memref<16x64xf32, #tpu.memory_space<vmem>>, vector<16x8xf32>
    tpu.vector_store %arg16[%c0_55, %c48], %111 {strides = array<i32>} : memref<16x64xf32, #tpu.memory_space<vmem>>, vector<16x8xf32>,
    "tpu.trace_start"() <{level = 10 : i32, message = "bnd,bmd->bnm"}> : () -> ()
    %cst_56 = arith.constant dense<0.000000e+00> : vector<2x8x8xf32>
    %113 = tpu.matmul %110, %110, %cst_56 {dimension_numbers = #tpu.dot_dimension_numbers<[2], [2], [1], [1], [0, 0, 0, 1, 1, 1], [0], [0]>} : vector<2x8x8xf32>, vector<2x8x8xf32>, vector<2x8x8xf32> -> vector<2x8x8xf32>
    "tpu.trace_stop"() : () -> ()
    %114 = arith.addf %79, %113 : vector<2x8x8xf32>
    %c0_57 = arith.constant 0 : index
    %c0_58 = arith.constant 0 : index
    %115 = vector.load %arg11[%c0_57, %c0_58] : memref<56x8xf32, #tpu.memory_space<vmem>>, vector<56x8xf32>
    %c0_59 = arith.constant 0 : index
    %c0_60 = arith.constant 0 : index
    %116 = vector.load %arg12[%c0_59, %c0_60] : memref<1x8xf32, #tpu.memory_space<vmem>>, vector<1x8xf32>
    %117 = vector.shape_cast %114 : vector<2x8x8xf32> to vector<16x8xf32>
    %cst_61 = arith.constant dense<0.000000e+00> : vector<16x8xf32>
    %118 = tpu.matmul %117, %2, %cst_61 {dimension_numbers = #tpu.dot_dimension_numbers<[1], [0], [0], [1], [0, 0, 1, 1], [], []>} : vector<16x8xf32>, vector<8x8xf32>, vector<16x8xf32> -> vector<16x8xf32>
    %119 = vector.broadcast %3 : vector<1x8xf32> to vector<16x8xf32>
    %120 = arith.addf %118, %119 : vector<16x8xf32>
    %cst_62 = arith.constant dense<0xFF800000> : vector<16xf32>
    %121 = vector.multi_reduction <maximumf>, %120, %cst_62 [1] : vector<16x8xf32> to vector<16xf32>
    %122 = vector.shape_cast %121 : vector<16xf32> to vector<16x1xf32>
    %123 = vector.broadcast %122 : vector<16x1xf32> to vector<16x8xf32>
    %124 = arith.subf %120, %123 : vector<16x8xf32>
    %125 = math.exp %124 : vector<16x8xf32>
    %cst_63 = arith.constant dense<0.000000e+00> : vector<16xf32>
    %126 = vector.multi_reduction <add>, %125, %cst_63 [1] : vector<16x8xf32> to vector<16xf32>
    %127 = vector.shape_cast %126 : vector<16xf32> to vector<16x1xf32>
    %128 = tpu.reciprocal %127 {approx = true} : vector<16x1xf32> -> vector<16x1xf32>
    %129 = vector.broadcast %128 : vector<16x1xf32> to vector<16x8xf32>
    %130 = arith.mulf %125, %129 : vector<16x8xf32>
    %131 = vector.shape_cast %130 : vector<16x8xf32> to vector<2x8x8xf32>
    "tpu.trace_start"() <{level = 10 : i32, message = "bnm,bmk->bnk"}> : () -> ()
    %cst_64 = arith.constant dense<0.000000e+00> : vector<2x8x8xf32>
    %132 = tpu.matmul %97, %131, %cst_64 {dimension_numbers = #tpu.dot_dimension_numbers<[2], [1], [1], [2], [0, 0, 0, 1, 1, 2], [0], [0]>} : vector<2x8x8xf32>, vector<2x8x8xf32>, vector<2x8x8xf32> -> vector<2x8x8xf32>
    "tpu.trace_stop"() : () -> ()
    %c0_65 = arith.constant 0 : index
    %c0_66 = arith.constant 0 : index
    %133 = vector.load %arg16[%c0_65, %c0_66] : memref<16x64xf32, #tpu.memory_space<vmem>>, vector<16x56xf32>
    %cst_67 = arith.constant dense<0.000000e+00> : vector<16x8xf32>
    %134 = tpu.matmul %133, %115, %cst_67 {dimension_numbers = #tpu.dot_dimension_numbers<[1], [0], [0], [1], [0, 0, 1, 1], [], []>} : vector<16x56xf32>, vector<56x8xf32>, vector<16x8xf32> -> vector<16x8xf32>
    %135 = vector.shape_cast %134 : vector<16x8xf32> to vector<2x8x8xf32>
    "tpu.trace_start"() <{level = 10 : i32, message = "bnm,bmh->bnh"}> : () -> ()
    %cst_68 = arith.constant dense<0.000000e+00> : vector<2x8x8xf32>
    %136 = tpu.matmul %132, %135, %cst_68 {dimension_numbers = #tpu.dot_dimension_numbers<[2], [1], [1], [2], [0, 0, 0, 1, 1, 2], [0], [0]>} : vector<2x8x8xf32>, vector<2x8x8xf32>, vector<2x8x8xf32> -> vector<2x8x8xf32>
    "tpu.trace_stop"() : () -> ()
    %137 = arith.addf %136, %135 : vector<2x8x8xf32>
    %138 = arith.addf %116, %116 : vector<1x8xf32>
    %139 = vector.shape_cast %138 : vector<1x8xf32> to vector<1x1x8xf32>
    %140 = vector.broadcast %139 : vector<1x1x8xf32> to vector<2x8x8xf32>
    %141 = arith.addf %137, %140 : vector<2x8x8xf32>
    %142 = vector.broadcast %7 : vector<2x8x1xf32> to vector<2x8x8xf32>
    %143 = arith.mulf %141, %142 : vector<2x8x8xf32>
    %cst_69 = arith.constant 0.000000e+00 : f32
    %144 = vector.broadcast %cst_69 : f32 to vector<2x8x8xf32>
    %145 = arith.maximumf %143, %144 : vector<2x8x8xf32>
    %146 = vector.shape_cast %145 : vector<2x8x8xf32> to vector<16x8xf32>
    %c0_70 = arith.constant 0 : index
    %c56 = arith.constant 56 : index
    %147 = vector.load %arg16[%c0_70, %c56] : memref<16x64xf32, #tpu.memory_space<vmem>>, vector<16x8xf32>
    tpu.vector_store %arg16[%c0_70, %c56], %146 {strides = array<i32>} : memref<16x64xf32, #tpu.memory_space<vmem>>, vector<16x8xf32>,
    %c0_71 = arith.constant 0 : index
    %c0_72 = arith.constant 0 : index
    %148 = vector.load %arg13[%c0_71, %c0_72] : memref<32x32xf32, #tpu.memory_space<vmem>>, vector<32x32xf32>
    %c0_73 = arith.constant 0 : index
    %c0_74 = arith.constant 0 : index
    %149 = vector.load %arg14[%c0_73, %c0_74] : memref<1x32xf32, #tpu.memory_space<vmem>>, vector<1x32xf32>
    %c0_75 = arith.constant 0 : index
    %c32_76 = arith.constant 32 : index
    %150 = vector.load %arg16[%c0_75, %c32_76] : memref<16x64xf32, #tpu.memory_space<vmem>>, vector<16x32xf32>
    %151 = arith.addf %150, %4 : vector<16x32xf32>
    %cst_77 = arith.constant dense<0.000000e+00> : vector<16x32xf32>
    %152 = tpu.matmul %151, %148, %cst_77 {dimension_numbers = #tpu.dot_dimension_numbers<[1], [0], [0], [1], [0, 0, 1, 1], [], []>} : vector<16x32xf32>, vector<32x32xf32>, vector<16x32xf32> -> vector<16x32xf32>
    %153 = vector.broadcast %149 : vector<1x32xf32> to vector<16x32xf32>
    %154 = arith.addf %152, %153 : vector<16x32xf32>
    %155 = vector.shape_cast %154 : vector<16x32xf32> to vector<2x8x32xf32>
    %c0_78 = arith.constant 0 : index
    %c0_79 = arith.constant 0 : index
    %c0_80 = arith.constant 0 : index
    %156 = vector.load %arg15[%c0_78, %c0_79, %c0_80] : memref<2x8x32xf32, #tpu.memory_space<vmem>>, vector<2x8x32xf32>
    tpu.vector_store %arg15[%c0_78, %c0_79, %c0_80], %155 {strides = array<i32>} : memref<2x8x32xf32, #tpu.memory_space<vmem>>, vector<2x8x32xf32>,
    return
  }
  func.func @transform_0(%arg0: i32) -> (i32, i32, i32) {
    %c0_i32 = arith.constant 0 : i32
    %c0_i32_0 = arith.constant 0 : i32
    %c0_i32_1 = arith.constant 0 : i32
    return %arg0, %c0_i32, %c0_i32_0 : i32, i32, i32
  }
  func.func @transform_1(%arg0: i32) -> (i32, i32, i32) {
    %c0_i32 = arith.constant 0 : i32
    %c0_i32_0 = arith.constant 0 : i32
    %c0_i32_1 = arith.constant 0 : i32
    return %arg0, %c0_i32, %c0_i32_0 : i32, i32, i32
  }
  func.func @transform_2(%arg0: i32) -> (i32, i32) {
    %c0_i32 = arith.constant 0 : i32
    %c0_i32_0 = arith.constant 0 : i32
    %c0_i32_1 = arith.constant 0 : i32
    return %c0_i32, %c0_i32_0 : i32, i32
  }
  func.func @transform_3(%arg0: i32) -> (i32, i32) {
    %c0_i32 = arith.constant 0 : i32
    %c0_i32_0 = arith.constant 0 : i32
    %c0_i32_1 = arith.constant 0 : i32
    return %c0_i32, %c0_i32_0 : i32, i32
  }
  func.func @transform_4(%arg0: i32) -> (i32, i32) {
    %c0_i32 = arith.constant 0 : i32
    %c0_i32_0 = arith.constant 0 : i32
    %c0_i32_1 = arith.constant 0 : i32
    return %c0_i32, %c0_i32_0 : i32, i32
  }
  func.func @transform_5(%arg0: i32) -> (i32, i32) {
    %c0_i32 = arith.constant 0 : i32
    %c0_i32_0 = arith.constant 0 : i32
    %c0_i32_1 = arith.constant 0 : i32
    return %c0_i32, %c0_i32_0 : i32, i32
  }
  func.func @transform_6(%arg0: i32) -> (i32, i32) {
    %c0_i32 = arith.constant 0 : i32
    %c0_i32_0 = arith.constant 0 : i32
    %c0_i32_1 = arith.constant 0 : i32
    return %c0_i32, %c0_i32_0 : i32, i32
  }
  func.func @transform_7(%arg0: i32) -> (i32, i32) {
    %c0_i32 = arith.constant 0 : i32
    %c0_i32_0 = arith.constant 0 : i32
    %c0_i32_1 = arith.constant 0 : i32
    return %c0_i32, %c0_i32_0 : i32, i32
  }
  func.func @transform_8(%arg0: i32) -> (i32, i32) {
    %c0_i32 = arith.constant 0 : i32
    %c0_i32_0 = arith.constant 0 : i32
    %c0_i32_1 = arith.constant 0 : i32
    return %c0_i32, %c0_i32_0 : i32, i32
  }
  func.func @transform_9(%arg0: i32) -> (i32, i32) {
    %c0_i32 = arith.constant 0 : i32
    %c0_i32_0 = arith.constant 0 : i32
    %c0_i32_1 = arith.constant 0 : i32
    return %c0_i32, %c0_i32_0 : i32, i32
  }
  func.func @transform_10(%arg0: i32) -> (i32, i32) {
    %c0_i32 = arith.constant 0 : i32
    %c0_i32_0 = arith.constant 0 : i32
    %c0_i32_1 = arith.constant 0 : i32
    return %c0_i32, %c0_i32_0 : i32, i32
  }
  func.func @transform_11(%arg0: i32) -> (i32, i32) {
    %c0_i32 = arith.constant 0 : i32
    %c0_i32_0 = arith.constant 0 : i32
    %c0_i32_1 = arith.constant 0 : i32
    return %c0_i32, %c0_i32_0 : i32, i32
  }
  func.func @transform_12(%arg0: i32) -> (i32, i32) {
    %c0_i32 = arith.constant 0 : i32
    %c0_i32_0 = arith.constant 0 : i32
    %c0_i32_1 = arith.constant 0 : i32
    return %c0_i32, %c0_i32_0 : i32, i32
  }
  func.func @transform_13(%arg0: i32) -> (i32, i32) {
    %c0_i32 = arith.constant 0 : i32
    %c0_i32_0 = arith.constant 0 : i32
    %c0_i32_1 = arith.constant 0 : i32
    return %c0_i32, %c0_i32_0 : i32, i32
  }
  func.func @transform_14(%arg0: i32) -> (i32, i32, i32) {
    %c0_i32 = arith.constant 0 : i32
    %c0_i32_0 = arith.constant 0 : i32
    %c0_i32_1 = arith.constant 0 : i32
    return %arg0, %c0_i32, %c0_i32_0 : i32, i32, i32
  }
}

</mosaic_0001>

<bundles_post_ra>
// kernel: tpu_custom_call.1
= control target key start
LH: loop header
LB: loop body
LE: loop exit
PB: predicated region body
PF: predicated region fallthrough
CT: control target
= control target key end

     0   :  { %s2284_s0 = inlined_call_operand.vmem [shape: f32[4,8,32], index: 0, kind: input, shape index: {}]   ;;  %s2285_s1 = inlined_call_operand.vmem [shape: f32[4,8,8], index: 1, kind: input, shape index: {}]   ;;  %s2286_s2 = inlined_call_operand.vmem [shape: f32[8,8], index: 2, kind: input, shape index: {}]   ;;  %s2287_s3 = inlined_call_operand.vmem [shape: f32[1,8], index: 3, kind: input, shape index: {}]   ;;  %s2288_s4 = inlined_call_operand.vmem [shape: f32[32,8], index: 4, kind: input, shape index: {}]   ;;  %s2289_s5 = inlined_call_operand.vmem [shape: f32[1,8], index: 5, kind: input, shape index: {}]   ;;  %s2290_s6 = inlined_call_operand.vmem [shape: f32[40,8], index: 6, kind: input, shape index: {}]   ;;  %s2291_s7 = inlined_call_operand.vmem [shape: f32[1,8], index: 7, kind: input, shape index: {}]   ;;  %s2292_s8 = inlined_call_operand.vmem [shape: f32[48,8], index: 8, kind: input, shape index: {}]   ;;  %s2293_s9 = inlined_call_operand.vmem [shape: f32[1,8], index: 9, kind: input, shape index: {}]   ;;  %s2294_s10 = inlined_call_operand.vmem [shape: f32[56,8], index: 10, kind: input, shape index: {}]   ;;  %s2295_s11 = inlined_call_operand.vmem [shape: f32[1,8], index: 11, kind: input, shape index: {}]   ;;  %s2296_s12 = inlined_call_operand.vmem [shape: f32[32,32], index: 12, kind: input, shape index: {}]   ;;  %s2297_s13 = inlined_call_operand.vmem [shape: f32[1,32], index: 13, kind: input, shape index: {}]   ;;  %s2298_s14 = inlined_call_operand.hbm [shape: f32[4,8,32], index: 14, kind: output, shape index: {}]  }
   0x1   :  { %2302 = sst [smem:[#allocation6_spill]] %s2284_s0 }
   0x2   :  { %2303 = sst [smem:[#allocation7_spill]] %s2285_s1 }
   0x3   :  { %2304 = sst [smem:[#allocation8_spill]] %s2286_s2 }
   0x4   :  { %2305 = sst [smem:[#allocation9_spill]] %s2287_s3 }
   0x5   :  { %2306 = sst [smem:[#allocation10_spill]] %s2288_s4 }
   0x6   :  { %19 = vsyncpa [#allocation4], 0 }
   0x7   :  { %21 = vsyncpa [#allocation4 + $0x1], 0  ;;  %s1926_s29 = smov 0   ;;  %s1928_s30 = smov 0  }
   0x8   :  { %s1930_s15 = smov 0   ;;  %s1932_s16 = smov 0  }
   0x9 LB: > { %s1947_s17 = sadd.s32 4294967295, %s1842_s16   ;;  %s1630_s18 = sadd.s32 4294967294, %s1842_s16   ;;  %s1842_s16 = sphi %s1932_s16, %s2319_s16   ;;  %s1838_s15 = sphi %s1930_s15, %s2318_s15   ;;  %s1834_s30 = sphi %s1928_s30, %s2317_s30   ;;  %s1830_s29 = sphi %s1926_s29, %s2316_s29  }
   0xa   : > { %s1951_s19 = sadd.s32 1, %s1842_s16   ;;  %s338_s20 = sadd.s32 1, %s1838_s15 }
   0xb   : > { %s335_s21 = ssub.s32 %s1842_s16, %s1951_s19  ;;  %p348_p0 = scmp.ne.s32.totalorder %s1838_s15, %s1834_s30 }
   0xc   : > { %p336_p1 = scmp.eq.s32.totalorder %s335_s21, 0  ;;  %p349_p2 = scmp.eq.s32.totalorder %s1947_s17, 1 }
   0xd   : > { %p354_p3 = scmp.ne.s32.totalorder %s1834_s30, %s1830_s29  ;;  %p355_p4 = scmp.eq.s32.totalorder %s1630_s18, 1 }
   0xe   : > { %s1962_s22 = scalar_select %p336_p1, %s1838_s15, %s338_s20  }
   0xf   : > { %p1964_p5 = por %p349_p2, %p348_p0  ;;  %p1968_p6 = por %p355_p4, %p354_p3 }
  0x10   : > { %p1633_p7 = scmp.ge.s32.totalorder %s1842_s16, 1  ;;  %p427_p8 = scmp.lt.s32.totalorder %s1842_s16, 3 }
  0x12   : > { %p428_p9 = pnand %p1633_p7, %p427_p8 }
  0x13   : > { %s1635_s25 = sshll.u32 (!%p428_p9), %s1947_s17, 1  ;;  %s2309_s0 = sld [smem:[#allocation6_spill]] (!%p428_p9) }
  0x14   : > { %431 = sbr.rel (%p428_p9) target bundleno = 3576 (0xdf8), region = 76  ;;  %p479_p10 = scmp.lt.s32.totalorder (!%p428_p9), %s1635_s25, 3 }
  0x15   : > { %s2310_s2 = sld [smem:[#allocation8_spill]] (!%p428_p9)  ;;  %s1845_s28 = smov (!%p428_p9), 40  }
  0x16   : > { %s2311_s3 = sld [smem:[#allocation9_spill]] (!%p428_p9)  ;;  %s1847_s20 = smov (!%p428_p9), 56  }
  0x17   : > { %s2312_s4 = sld [smem:[#allocation10_spill]] (!%p428_p9) }
  0x18   : > { %s2314_s1 = sld [smem:[#allocation7_spill]] (!%p428_p9) }
  0x19   : > { %s2321_s25 = smov (!%p479_p10, %s1635_s25), 3  ;;  %vm506_vm0 = vcmask 261120   ;;  %vm497_vm1 = vcmask 64512   ;;  %v559_v42 = vld [vmem:[%s2289_s5] sm:$0x1]  ;;  %vm755_vm2 = vcmask 326912  }
  0x1a   : > { %s2299_s26 = sshll.u32 %s2321_s25, 3  ;;  %v737_v44 = vadd.f32 %v559_v42, %v559_v42  ;;  %vm903_vm3 = vcmask 326656   ;;  %vm997_vm4 = vcmask 392512   ;;  %vm1146_vm5 = vcmask 392192  }
  0x1b   : > { %s482_s18 = scalar_lea.vmem %s2309_s0, %s2299_s26  ;;  %v2002_v2 = vld [vmem:[%s2310_s2] sm:$0xff]  ;;  %vm1240_vm6 = vcmask 458112   ;;  %vm1390_vm7 = vcmask 457728   ;;  %vm1484_vm8 = vcmask 523712  }
  0x1c   : > { %v1983_v0 = vld [vmem:[%s482_s18] sm:$0xff]  ;;  %v1985_v1 = vld [vmem:[%s482_s18 + $0x8] sm:$0xff]  ;;  %1695 = vmatpush.msra.mxu2 %v2002_v2  ;;  %s2313_s18 = sshll.u32 %s2321_s25, 3  ;;  %v739_v45 = vperm.slane %v737_v44, 0  ;;  %s2300_s25 = smov 32  }
  0x1d   : > { %507 = vst.msk [vmem:[#allocation2] sm:$0xff] %vm506_vm0, %v1983_v0  ;;  %1639 = vmatpush.xpose.msk.msra.mxu0 %vm506_vm0, %v1983_v0  ;;  %1641 = vmatpush.xpose.msk.msra.mxu1 %vm506_vm0, %v1985_v1  ;;  %v2017_v5 = vld [vmem:[%s2311_s3] ss:$0 sm:$0xff]  ;;  %v558_v22 = vld [vmem:[%s2312_s4 + $0x18] sm:$0xff]  ;;  %v557_v23 = vld [vmem:[%s2312_s4 + $0x10] sm:$0xff] }
  0x1e   : > { %508 = vst.msk [vmem:[#allocation2 + $0x8] sm:$0xff] %vm506_vm0, %v1985_v1  ;;  %v556_v24 = vld [vmem:[%s2312_s4 + $0x8] sm:$0xff]  ;;  %v555_v25 = vld [vmem:[%s2312_s4] sm:$0xff]  ;;  %s488_s26 = scalar_lea.vmem %s2314_s1, %s2313_s18  ;;  %s2315_s1 = smov 32  }
  0x1f   : > { %v493_v32 = vld [vmem:[%s488_s26] sm:$0xff]  ;;  %v494_v35 = vld [vmem:[%s488_s26 + $0x8] sm:$0xff]  ;;  %s1846_s26 = smov 48   ;;  %s475_s18 = sand.u32 1, %s1834_s30  }
  0x20   : > { %1640 = vmatmul.msk.f32.vlgmr.msra.gmra.mxu0 %vm506_vm0, %v1983_v0  ;;  %1642 = vmatmul.msk.f32.vlgmr.msra.gmra.mxu1 %vm506_vm0, %v1985_v1  ;;  %v498_v37 = vsel %vm497_vm1, %v493_v32, 0.0  ;;  %v501_v39 = vsel %vm497_vm1, %v494_v35, 0.0  ;;  %s1541_s3 = scalar_lea.sflag [#allocation4], %s475_s18 }
  0x21   : > { %584 = vmatpush.msrb.mxu0 %v2002_v2  ;;  %499 = vadd.xlane.f32.xlu2 %v498_v37 }
  0x23   : > { %680 = vmatpush.msra.mxu0 %v558_v22 }
  0x24   : > { %v660_v26 = vld [vmem:[#allocation2] sm:$0xff] }
  0x25   : > { %681 = vmatpush.msra.mxu0 %v557_v23  ;;  %v661_v27 = vld [vmem:[#allocation2 + $0x8] sm:$0xff] }
  0x27   : > { %682 = vmatpush.msra.mxu0 %v556_v24 }
  0x29   : > { %683 = vmatpush.msra.mxu0 %v555_v25  ;;  %502 = vadd.xlane.f32.xlu2 %v501_v39 }
  0x94   : > { %v500_v43 = vpop.xlane.xlu2 %499 }
  0x9c   : > { %v503_v52 = vpop.xlane.xlu2 %502 }
  0x9d   : > { %v2006_v3 = vpop.f32.mrf.mxu0  ;;  %v2008_v4 = vpop.f32.mrf.mxu1 }
  0x9e   : > { %1643 = vmatmul.msk.f32.vlgmr.msrb.gmra.mxu0 %vm497_vm1, %v2006_v3  ;;  %1644 = vmatmul.msk.f32.vlgmr.msra.gmra.mxu2 %vm497_vm1, %v2008_v4 }
  0xa6   : > { %1647 = vmatmul.msk.f32.vlgmr.msra.gmra.mxu0 %vm506_vm0, %v660_v26 }
  0xae   : > { %1648 = vmatmul.msk.f32.gmra.mxu0 %vm506_vm0, %v661_v27 }
 0x11b   : > { %v586_v6 = vpop.f32.mrf.mxu0 }
 0x11c   : > { %v587_v7 = vadd.f32 %v2017_v5, %v586_v6 }
 0x11e   : > { %v592_v8 = vsel %vm497_vm1, %v587_v7, -inf }
 0x11f   : > { %593 = vmax.xlane.f32.xlu0 %v592_v8 }
 0x121   : > { %v589_v9 = vpop.f32.mrf.mxu2 }
 0x122   : > { %v590_v10 = vadd.f32 %v2017_v5, %v589_v9 }
 0x123   : > { %v685_v36 = vpop.f32.mrf.mxu0 }
 0x124   : > { %v595_v11 = vsel %vm497_vm1, %v590_v10, -inf  ;;  %709 = vmatpush.msrb.mxu1 %v685_v36 }
 0x127   : > { %596 = vmax.xlane.f32.xlu0 %v595_v11  ;;  %v806_v11 = vld [vmem:[%s2290_s6 + $0x10] sm:$0xff] }
 0x12b   : > { %v688_v38 = vpop.f32.mrf.mxu0 }
 0x12c   : > { %732 = vmatpush.msrb.mxu2 %v688_v38 }
 0x12e   : > { %831 = vmatpush.msra.mxu2 %v2002_v2 }
 0x192   : > { %v594_v12 = vpop.xlane.xlu0 %593 }
 0x193   : > { %v598_v13 = vsub.f32 %v587_v7, %v594_v12  ;;  %v805_v12 = vld [vmem:[%s2290_s6 + $0x8] sm:$0xff] }
 0x195   : > { %v600_v14 = vmul.f32 1.442695, %v598_v13  ;;  %v804_v13 = vld [vmem:[%s2290_s6] sm:$0xff] }
 0x197   : > { %1744 = vpow2.f32 %v600_v14 }
 0x19a   : > { %v597_v15 = vpop.xlane.xlu0 %596 }
 0x19b   : > { %v599_v16 = vsub.f32 %v590_v10, %v597_v15  ;;  %v807_v10 = vld [vmem:[%s2290_s6 + $0x18] sm:$0xff] }
 0x19d   : > { %v1745_v17 = vpop.eup %1744  ;;  %v602_v18 = vmul.f32 1.442695, %v599_v16 }
 0x19e   : > { %v604_v19 = vsel %vm497_vm1, %v1745_v17, 0.0 }
 0x19f   : > { %1746 = vpow2.f32 %v602_v18  ;;  %605 = vadd.xlane.f32.xlu1 %v604_v19 }
 0x1a5   : > { %v1747_v20 = vpop.eup %1746 }
 0x1a6   : > { %v607_v21 = vsel %vm497_vm1, %v1747_v20, 0.0 }
 0x1a7   : > { %608 = vadd.xlane.f32.xlu1 %v607_v21 }
 0x212   : > { %v606_v28 = vpop.xlane.xlu1 %605 }
 0x213   : > { %1748 = vrcp.f32 %v606_v28 }
 0x219   : > { %v1749_v29 = vpop.eup %1748 }
 0x21a   : > { %v609_v30 = vpop.xlane.xlu1 %608  ;;  %v612_v31 = vmul.f32 %v1749_v29, %v1745_v17 }
 0x21b   : > { %1750 = vrcp.f32 %v609_v30 }
 0x21c   : > { %632 = vmatpush.msra.mxu3 %v612_v31  ;;  %1752 = vrcp.f32 %v500_v43 }
 0x21d   : > { %1645 = vmatmul.msk.f32.vlgmr.msra.gmra.mxu3 %vm497_vm1, %v493_v32  ;;  %1754 = vrcp.f32 %v503_v52  ;;  %v1051_v52 = vld [vmem:[%s2292_s8 + $0x28] sm:$0xff] }
 0x221   : > { %v1751_v33 = vpop.eup %1750 }
 0x222   : > { %v613_v34 = vmul.f32 %v1751_v33, %v1747_v20  ;;  %v2060_v48 = vpop.eup %1752 }
 0x223   : > { %v2065_v55 = vpop.eup %1754 }
 0x224   : > { %655 = vmatpush.msrb.mxu3 %v613_v34 }
 0x225   : > { %1646 = vmatmul.msk.f32.vlgmr.msrb.gmra.mxu3 %vm497_vm1, %v494_v35 }
 0x2a0   : > { %v2049_v40 = vpop.f32.mrf.mxu3 }
 0x2a1   : > { %1649 = vmatmul.msk.f32.vlgmr.msrb.gmra.mxu1 %vm497_vm1, %v2049_v40 }
 0x2a8   : > { %v2053_v41 = vpop.f32.mrf.mxu3 }
 0x2a9   : > { %1650 = vmatmul.msk.f32.vlgmr.msrb.gmra.mxu2 %vm497_vm1, %v2053_v41 }
 0x31e   : > { %v711_v46 = vpop.f32.mrf.mxu1 }
 0x31f   : > { %v712_v47 = vadd.f32 %v711_v46, %v685_v36 }
 0x321   : > { %v741_v49 = vadd.f32 %v739_v45, %v712_v47 }
 0x323   : > { %v743_v50 = vmul.f32 %v2060_v48, %v741_v49 }
 0x325   : > { %v745_v51 = vmax.f32 %v743_v50, 0.0 }
 0x327   : > { %1651 = vmatpush.xpose.msk.msra.mxu3 %vm497_vm1, %v745_v51 }
 0x32a   : > { %1652 = vmatmul.msk.f32.vlgmr.msra.gmra.mxu3 %vm497_vm1, %v745_v51 }
 0x32c   : > { %v734_v53 = vpop.f32.mrf.mxu2 }
 0x32d   : > { %v735_v54 = vadd.f32 %v734_v53, %v688_v38  ;;  %v809_v38 = vld [vmem:[%s2291_s7] sm:$0x1] }
 0x32e   : > { %v979_v39 = vadd.f32 %v809_v38, %v809_v38  ;;  %v1050_v53 = vld [vmem:[%s2292_s8 + $0x20] sm:$0xff] }
 0x32f   : > { %v742_v56 = vadd.f32 %v739_v45, %v735_v54  ;;  %v1049_v54 = vld [vmem:[%s2292_s8 + $0x18] sm:$0xff] }
 0x331   : > { %v744_v57 = vmul.f32 %v2065_v55, %v742_v56  ;;  %v1048_v56 = vld [vmem:[%s2292_s8 + $0x10] sm:$0xff] }
 0x333   : > { %v746_v58 = vmax.f32 %v744_v57, 0.0  ;;  %v1047_v57 = vld [vmem:[%s2292_s8 + $0x8] sm:$0xff] }
 0x335   : > { %1653 = vmatpush.xpose.msk.msra.mxu1 %vm497_vm1, %v746_v58 }
 0x338   : > { %1654 = vmatmul.msk.f32.vlgmr.msra.gmra.mxu1 %vm497_vm1, %v746_v58 }
 0x3ad   : > { %v777_v59 = vpop.f32.mrf.mxu3 }
 0x3ae   : > { %v2071_v60 = vadd.f32 %v777_v59, %v2006_v3  ;;  %v1046_v59 = vld [vmem:[%s2292_s8] sm:$0xff] }
 0x3b0   : > { %1655 = vmatmul.msk.f32.vlgmr.msra.gmra.mxu2 %vm497_vm1, %v2071_v60 }
 0x3b5   : > { %v799_v61 = vpop.f32.mrf.mxu1 }
 0x3b6   : > { %v2076_v62 = vadd.f32 %v799_v61, %v2008_v4  ;;  %v808_v4 = vld [vmem:[%s2290_s6 + $0x20] sm:$0xff] }
 0x3b7   : > { %921 = vmatpush.msrb.mxu1 %v808_v4 }
 0x3b8   : > { %1656 = vmatmul.msk.f32.gmra.mxu2 %vm497_vm1, %v2076_v62 }
 0x3b9   : > { %922 = vmatpush.msrb.mxu1 %v807_v10 }
 0x3bb   : > { %923 = vmatpush.msrb.mxu1 %v806_v11 }
 0x3bd   : > { %924 = vmatpush.msrb.mxu1 %v805_v12 }
 0x3bf   : > { %925 = vmatpush.msrb.mxu1 %v804_v13 }
 0x433   : > { %v833_v63 = vpop.f32.mrf.mxu2 }
 0x434   : > { %v834_v6 = vadd.f32 %v2017_v5, %v833_v63 }
 0x436   : > { %v839_v7 = vsel %vm497_vm1, %v834_v6, -inf }
 0x437   : > { %840 = vmax.xlane.f32.xlu0 %v839_v7 }
 0x43b   : > { %v836_v8 = vpop.f32.mrf.mxu2 }
 0x43c   : > { %v837_v3 = vadd.f32 %v2017_v5, %v836_v8 }
 0x43e   : > { %v842_v9 = vsel %vm497_vm1, %v837_v3, -inf }
 0x43f   : > { %843 = vmax.xlane.f32.xlu1 %v842_v9 }
 0x44b   : > { %749 = vrot.lane.b32.xlu0 %v745_v51, %s2300_s25 }
 0x4aa   : > { %v841_v14 = vpop.xlane.xlu0 %840 }
 0x4ab   : > { %v845_v15 = vsub.f32 %v834_v6, %v841_v14 }
 0x4ad   : > { %v847_v16 = vmul.f32 1.442695, %v845_v15 }
 0x4af   : > { %1756 = vpow2.f32 %v847_v16 }
 0x4b2   : > { %v844_v17 = vpop.xlane.xlu1 %843 }
 0x4b3   : > { %v846_v18 = vsub.f32 %v837_v3, %v844_v17 }
 0x4b5   : > { %v1757_v19 = vpop.eup %1756  ;;  %v849_v20 = vmul.f32 1.442695, %v846_v18 }
 0x4b6   : > { %v851_v21 = vsel %vm497_vm1, %v1757_v19, 0.0 }
 0x4b7   : > { %1758 = vpow2.f32 %v849_v20  ;;  %852 = vadd.xlane.f32.xlu2 %v851_v21 }
 0x4bd   : > { %v1759_v22 = vpop.eup %1758  ;;  %v750_v23 = vpop.permute.xlu0 %749 }
 0x4be   : > { %756 = vst.msk [vmem:[#allocation2] sm:$0xff] %vm755_vm2, %v750_v23  ;;  %v854_v24 = vsel %vm497_vm1, %v1759_v22, 0.0 }
 0x4bf   : > { %855 = vadd.xlane.f32.xlu1 %v854_v24 }
 0x4c5   : > { %v901_v25 = vld [vmem:[#allocation2] sm:$0xff] }
 0x4c6   : > { %1659 = vmatmul.msk.f32.vlgmr.msrb.gmra.mxu1 %vm903_vm3, %v901_v25 }
 0x4cf   : > { %751 = vrot.lane.b32.xlu2 %v746_v58, %s2315_s1 }
 0x52a   : > { %v853_v26 = vpop.xlane.xlu2 %852 }
 0x52b   : > { %1760 = vrcp.f32 %v853_v26 }
 0x531   : > { %v1761_v27 = vpop.eup %1760 }
 0x532   : > { %v752_v28 = vpop.permute.xlu2 %751  ;;  %v856_v29 = vpop.xlane.xlu1 %855  ;;  %v859_v30 = vmul.f32 %v1761_v27, %v1757_v19 }
 0x533   : > { %757 = vst.msk [vmem:[#allocation2 + $0x8] sm:$0xff] %vm755_vm2, %v752_v28  ;;  %1762 = vrcp.f32 %v856_v29 }
 0x534   : > { %876 = vmatpush.msrb.mxu3 %v859_v30 }
 0x535   : > { %1657 = vmatmul.msk.f32.vlgmr.msrb.gmra.mxu3 %vm497_vm1, %v2049_v40  ;;  %v981_v40 = vperm.slane %v979_v39, 0 }
 0x539   : > { %v1763_v31 = vpop.eup %1762 }
 0x53a   : > { %v902_v32 = vld [vmem:[#allocation2 + $0x8] sm:$0xff]  ;;  %v860_v33 = vmul.f32 %v1763_v31, %v1759_v22 }
 0x53b   : > { %1660 = vmatmul.msk.f32.gmra.mxu1 %vm903_vm3, %v902_v32 }
 0x53c   : > { %896 = vmatpush.msrb.mxu0 %v860_v33 }
 0x53d   : > { %1658 = vmatmul.msk.f32.vlgmr.msrb.gmra.mxu0 %vm497_vm1, %v2053_v41 }
 0x543   : > { %v927_v34 = vpop.f32.mrf.mxu1 }
 0x544   : > { %951 = vmatpush.msra.mxu3 %v927_v34 }
 0x5b8   : > { %v2111_v35 = vpop.f32.mrf.mxu3  ;;  %v930_v36 = vpop.f32.mrf.mxu1 }
 0x5b9   : > { %1661 = vmatmul.msk.f32.vlgmr.msra.gmra.mxu3 %vm497_vm1, %v2111_v35  ;;  %974 = vmatpush.msra.mxu0 %v930_v36 }
 0x5ba   : > { %v2115_v37 = vpop.f32.mrf.mxu0 }
 0x5bb   : > { %1074 = vmatpush.msrb.mxu0 %v2002_v2 }
 0x5bc   : > { %1662 = vmatmul.msk.f32.vlgmr.msra.gmra.mxu0 %vm497_vm1, %v2115_v37 }
 0x639   : > { %v976_v41 = vpop.f32.mrf.mxu0 }
 0x63a   : > { %v977_v42 = vadd.f32 %v976_v41, %v930_v36 }
 0x63c   : > { %v984_v43 = vadd.f32 %v981_v40, %v977_v42  ;;  %v953_v44 = vpop.f32.mrf.mxu3 }
 0x63d   : > { %v954_v45 = vadd.f32 %v953_v44, %v927_v34 }
 0x63e   : > { %v986_v46 = vmul.f32 %v2065_v55, %v984_v43 }
 0x63f   : > { %v983_v47 = vadd.f32 %v981_v40, %v954_v45 }
 0x640   : > { %v988_v49 = vmax.f32 %v986_v46, 0.0 }
 0x641   : > { %v985_v50 = vmul.f32 %v2060_v48, %v983_v47 }
 0x642   : > { %993 = vrot.lane.b32.xlu2 %v988_v49, %s1845_s28  ;;  %1665 = vmatpush.xpose.msk.msrb.mxu3 %vm497_vm1, %v988_v49 }
 0x643   : > { %v987_v51 = vmax.f32 %v985_v50, 0.0 }
 0x645   : > { %1666 = vmatmul.msk.f32.vlgmr.msrb.gmra.mxu3 %vm497_vm1, %v988_v49  ;;  %991 = vrot.lane.b32.xlu0 %v987_v51, %s1845_s28 }
 0x646   : > { %1663 = vmatpush.xpose.msk.msrb.mxu2 %vm497_vm1, %v987_v51  ;;  %1163 = vmatpush.msra.mxu3 %v1051_v52 }
 0x648   : > { %1164 = vmatpush.msra.mxu3 %v1050_v53 }
 0x649   : > { %1664 = vmatmul.msk.f32.vlgmr.msrb.gmra.mxu2 %vm497_vm1, %v987_v51 }
 0x64a   : > { %1165 = vmatpush.msra.mxu3 %v1049_v54 }
 0x64c   : > { %1166 = vmatpush.msra.mxu3 %v1048_v56 }
 0x64e   : > { %1167 = vmatpush.msra.mxu3 %v1047_v57 }
 0x650   : > { %1168 = vmatpush.msra.mxu3 %v1046_v59  ;;  %v1294_v59 = vld [vmem:[%s2294_s10 + $0x28] sm:$0xff] }
 0x69c   : > { %v994_v58 = vpop.permute.xlu2 %993 }
 0x69d   : > { %999 = vst.msk [vmem:[#allocation2 + $0x8] sm:$0xff] %vm997_vm4, %v994_v58  ;;  %v1295_v58 = vld [vmem:[%s2294_s10 + $0x30] sm:$0xff] }
 0x69e   : > { %1406 = vmatpush.msrb.mxu3 %v1295_v58 }
 0x6a0   : > { %1407 = vmatpush.msrb.mxu3 %v1294_v59 }
 0x6a4   : > { %v1145_v6 = vld [vmem:[#allocation2 + $0x8] sm:$0xff] }
 0x6b7   : > { %v992_v61 = vpop.permute.xlu0 %991 }
 0x6b8   : > { %998 = vst.msk [vmem:[#allocation2] sm:$0xff] %vm997_vm4, %v992_v61  ;;  %v1293_v61 = vld [vmem:[%s2294_s10 + $0x20] sm:$0xff] }
 0x6b9   : > { %1408 = vmatpush.msrb.mxu3 %v1293_v61 }
 0x6bf   : > { %v1144_v63 = vld [vmem:[#allocation2] sm:$0xff] }
 0x6c0   : > { %1671 = vmatmul.msk.f32.vlgmr.msra.gmra.mxu3 %vm1146_vm5, %v1144_v63  ;;  %v1291_v63 = vld [vmem:[%s2294_s10 + $0x10] sm:$0xff] }
 0x6c8   : > { %1672 = vmatmul.msk.f32.gmra.mxu3 %vm1146_vm5, %v1145_v6  ;;  %v1041_v3 = vpop.f32.mrf.mxu3  ;;  %v1290_v6 = vld [vmem:[%s2294_s10 + $0x8] sm:$0xff] }
 0x6c9   : > { %v2153_v9 = vadd.f32 %v1041_v3, %v2076_v62 }
 0x6cc   : > { %v1019_v7 = vpop.f32.mrf.mxu2 }
 0x6cd   : > { %v2148_v8 = vadd.f32 %v1019_v7, %v2071_v60  ;;  %v1289_v7 = vld [vmem:[%s2294_s10] sm:$0xff] }
 0x6cf   : > { %1667 = vmatmul.msk.f32.vlgmr.msrb.gmra.mxu0 %vm497_vm1, %v2148_v8 }
 0x6d7   : > { %1668 = vmatmul.msk.f32.gmra.mxu0 %vm497_vm1, %v2153_v9 }
 0x743   : > { %v1170_v24 = vpop.f32.mrf.mxu3 }
 0x74b   : > { %v1173_v28 = vpop.f32.mrf.mxu3 }
 0x74c   : > { %v1076_v4 = vpop.f32.mrf.mxu0 }
 0x74d   : > { %v1077_v60 = vadd.f32 %v2017_v5, %v1076_v4 }
 0x74f   : > { %v1082_v13 = vsel %vm497_vm1, %v1077_v60, -inf }
 0x754   : > { %v1079_v10 = vpop.f32.mrf.mxu0 }
 0x755   : > { %v1080_v11 = vadd.f32 %v2017_v5, %v1079_v10 }
 0x757   : > { %v1085_v12 = vsel %vm497_vm1, %v1080_v11, -inf }
 0x758   : > { %1086 = vmax.xlane.f32.xlu1 %v1085_v12 }
 0x760   : > { %1083 = vmax.xlane.f32.xlu1 %v1082_v13 }
 0x7cb   : > { %v1087_v14 = vpop.xlane.xlu1 %1086 }
 0x7cc   : > { %v1089_v15 = vsub.f32 %v1080_v11, %v1087_v14 }
 0x7ce   : > { %v1092_v16 = vmul.f32 1.442695, %v1089_v15 }
 0x7d0   : > { %1764 = vpow2.f32 %v1092_v16 }
 0x7d3   : > { %v1084_v62 = vpop.xlane.xlu1 %1083 }
 0x7d4   : > { %v1088_v17 = vsub.f32 %v1077_v60, %v1084_v62 }
 0x7d6   : > { %v1765_v18 = vpop.eup %1764  ;;  %v1090_v19 = vmul.f32 1.442695, %v1088_v17 }
 0x7d7   : > { %v1097_v20 = vsel %vm497_vm1, %v1765_v18, 0.0 }
 0x7d8   : > { %1766 = vpow2.f32 %v1090_v19  ;;  %1098 = vadd.xlane.f32.xlu1 %v1097_v20 }
 0x7de   : > { %v1767_v21 = vpop.eup %1766 }
 0x7df   : > { %v1094_v22 = vsel %vm497_vm1, %v1767_v21, 0.0 }
 0x7e0   : > { %1095 = vadd.xlane.f32.xlu0 %v1094_v22 }
 0x84b   : > { %v1099_v23 = vpop.xlane.xlu1 %1098 }
 0x84c   : > { %1768 = vrcp.f32 %v1099_v23 }
 0x852   : > { %v1769_v25 = vpop.eup %1768 }
 0x853   : > { %v1096_v26 = vpop.xlane.xlu0 %1095  ;;  %v1103_v27 = vmul.f32 %v1769_v25, %v1765_v18 }
 0x854   : > { %1770 = vrcp.f32 %v1096_v26 }
 0x855   : > { %1139 = vmatpush.msra.mxu2 %v1103_v27  ;;  %v1296_v27 = vld [vmem:[%s2295_s11] sm:$0x1] }
 0x856   : > { %1670 = vmatmul.msk.f32.vlgmr.msra.gmra.mxu2 %vm497_vm1, %v2115_v37 }
 0x857   : > { %1217 = vmatpush.msrb.mxu2 %v1173_v28 }
 0x859   : > { %1318 = vmatpush.msra.mxu2 %v2002_v2  ;;  %v1052_v2 = vld [vmem:[%s2293_s9] sm:$0x1] }
 0x85a   : > { %v1771_v29 = vpop.eup %1770  ;;  %v1222_v33 = vadd.f32 %v1052_v2, %v1052_v2 }
 0x85b   : > { %v1102_v30 = vmul.f32 %v1771_v29, %v1767_v21 }
 0x85c   : > { %v1224_v34 = vperm.slane %v1222_v33, 0 }
 0x85d   : > { %1119 = vmatpush.msra.mxu1 %v1102_v30 }
 0x85e   : > { %1669 = vmatmul.msk.f32.vlgmr.msra.gmra.mxu1 %vm497_vm1, %v2111_v35 }
 0x85f   : > { %1194 = vmatpush.msrb.mxu1 %v1170_v24 }
 0x8d9   : > { %v2168_v31 = vpop.f32.mrf.mxu2 }
 0x8da   : > { %1674 = vmatmul.msk.f32.vlgmr.msrb.gmra.mxu2 %vm497_vm1, %v2168_v31 }
 0x8db   : > { %v2172_v32 = vpop.f32.mrf.mxu1 }
 0x8dc   : > { %1673 = vmatmul.msk.f32.vlgmr.msrb.gmra.mxu1 %vm497_vm1, %v2172_v32 }
 0x959   : > { %v1196_v36 = vpop.f32.mrf.mxu1 }
 0x95a   : > { %v1197_v37 = vadd.f32 %v1196_v36, %v1170_v24 }
 0x95c   : > { %v1226_v35 = vadd.f32 %v1224_v34, %v1197_v37 }
 0x95d   : > { %v1219_v38 = vpop.f32.mrf.mxu2 }
 0x95e   : > { %v1228_v39 = vmul.f32 %v2060_v48, %v1226_v35  ;;  %v1220_v40 = vadd.f32 %v1219_v38, %v1173_v28  ;;  %v1466_v28 = vadd.f32 %v1296_v27, %v1296_v27 }
 0x960   : > { %v1230_v41 = vmax.f32 %v1228_v39, 0.0  ;;  %v1227_v42 = vadd.f32 %v1224_v34, %v1220_v40  ;;  %v1468_v29 = vperm.slane %v1466_v28, 0  ;;  %v1489_v40 = vld [vmem:[%s2296_s12 + $0x10] sm:$0xff] }
 0x962   : > { %1675 = vmatpush.xpose.msk.msra.mxu0 %vm497_vm1, %v1230_v41  ;;  %v1229_v43 = vmul.f32 %v2065_v55, %v1227_v42 }
 0x964   : > { %v1231_v44 = vmax.f32 %v1229_v43, 0.0 }
 0x965   : > { %1676 = vmatmul.msk.f32.vlgmr.msra.gmra.mxu0 %vm497_vm1, %v1230_v41 }
 0x966   : > { %1236 = vrot.lane.b32.xlu0 %v1231_v44, %s1846_s26  ;;  %1677 = vmatpush.xpose.msk.msra.mxu1 %vm497_vm1, %v1231_v44 }
 0x969   : > { %1678 = vmatmul.msk.f32.vlgmr.msra.gmra.mxu1 %vm497_vm1, %v1231_v44 }
 0x9d8   : > { %v1237_v45 = vpop.permute.xlu0 %1236 }
 0x9d9   : > { %1242 = vst.msk [vmem:[#allocation2 + $0x8] sm:$0xff] %vm1240_vm6, %v1237_v45 }
 0x9e0   : > { %v1389_v62 = vld [vmem:[#allocation2 + $0x8] sm:$0xff] }
 0x9e2   : > { %v1262_v46 = vpop.f32.mrf.mxu0 }
 0x9e3   : > { %v1287_v47 = vadd.f32 %v1262_v46, %v2148_v8 }
 0x9e5   : > { %1679 = vmatmul.msk.f32.vlgmr.msra.gmra.mxu2 %vm497_vm1, %v1287_v47 }
 0x9e6   : > { %v1284_v49 = vpop.f32.mrf.mxu1 }
 0x9e7   : > { %v1288_v50 = vadd.f32 %v1284_v49, %v2153_v9 }
 0x9ed   : > { %1680 = vmatmul.msk.f32.gmra.mxu2 %vm497_vm1, %v1288_v50  ;;  %v1743_v50 = vld [vmem:[%s2297_s13] ss:$0 sm:$0xff] }
 0xa68   : > { %v1320_v51 = vpop.f32.mrf.mxu2 }
 0xa69   : > { %v1321_v52 = vadd.f32 %v2017_v5, %v1320_v51 }
 0xa6b   : > { %v1326_v53 = vsel %vm497_vm1, %v1321_v52, -inf }
 0xa6c   : > { %1327 = vmax.xlane.f32.xlu1 %v1326_v53 }
 0xa70   : > { %v1323_v54 = vpop.f32.mrf.mxu2 }
 0xa71   : > { %v1324_v56 = vadd.f32 %v2017_v5, %v1323_v54  ;;  %v1292_v5 = vld [vmem:[%s2294_s10 + $0x18] sm:$0xff] }
 0xa72   : > { %1409 = vmatpush.msrb.mxu3 %v1292_v5 }
 0xa73   : > { %v1329_v57 = vsel %vm497_vm1, %v1324_v56, -inf }
 0xa74   : > { %1330 = vmax.xlane.f32.xlu2 %v1329_v57  ;;  %1410 = vmatpush.msrb.mxu3 %v1291_v63 }
 0xa76   : > { %1411 = vmatpush.msrb.mxu3 %v1290_v6 }
 0xa78   : > { %1412 = vmatpush.msrb.mxu3 %v1289_v7 }
 0xa85   : > { %1234 = vrot.lane.b32.xlu1 %v1230_v41, %s1846_s26  ;;  %s1694_s26 = sshll.u32 %s1947_s17, 4 }
 0xa86   : > { %s1552_s27 = scalar_lea.hbm %s2298_s14, %s1694_s26  ;;  %s1800_s26 = scalar_lea.hbm %s2298_s14, 32 }
 0xadf   : > { %v1328_v8 = vpop.xlane.xlu1 %1327 }
 0xae0   : > { %v1332_v3 = vsub.f32 %v1321_v52, %v1328_v8 }
 0xae2   : > { %v1334_v9 = vmul.f32 1.442695, %v1332_v3 }
 0xae4   : > { %1772 = vpow2.f32 %v1334_v9 }
 0xae7   : > { %v1331_v4 = vpop.xlane.xlu2 %1330 }
 0xae8   : > { %v1333_v10 = vsub.f32 %v1324_v56, %v1331_v4 }
 0xaea   : > { %v1773_v11 = vpop.eup %1772  ;;  %v1336_v12 = vmul.f32 1.442695, %v1333_v10 }
 0xaeb   : > { %v1338_v60 = vsel %vm497_vm1, %v1773_v11, 0.0 }
 0xaec   : > { %1774 = vpow2.f32 %v1336_v12  ;;  %1339 = vadd.xlane.f32.xlu1 %v1338_v60 }
 0xaf2   : > { %v1775_v13 = vpop.eup %1774 }
 0xaf3   : > { %v1341_v14 = vsel %vm497_vm1, %v1775_v13, 0.0 }
 0xaf4   : > { %1342 = vadd.xlane.f32.xlu2 %v1341_v14 }
 0xaf7   : > { %v1235_v15 = vpop.permute.xlu1 %1234 }
 0xaf8   : > { %1241 = vst.msk [vmem:[#allocation2] sm:$0xff] %vm1240_vm6, %v1235_v15 }
 0xaff   : > { %v1388_v16 = vld [vmem:[#allocation2] sm:$0xff] }
 0xb00   : > { %1683 = vmatmul.msk.f32.vlgmr.msrb.gmra.mxu3 %vm1390_vm7, %v1388_v16 }
 0xb08   : > { %1684 = vmatmul.msk.f32.gmra.mxu3 %vm1390_vm7, %v1389_v62 }
 0xb5f   : > { %v1340_v17 = vpop.xlane.xlu1 %1339 }
 0xb60   : > { %1776 = vrcp.f32 %v1340_v17 }
 0xb66   : > { %v1777_v18 = vpop.eup %1776 }
 0xb67   : > { %v1343_v19 = vpop.xlane.xlu2 %1342  ;;  %v1346_v20 = vmul.f32 %v1777_v18, %v1773_v11 }
 0xb68   : > { %1778 = vrcp.f32 %v1343_v19 }
 0xb69   : > { %1363 = vmatpush.msrb.mxu0 %v1346_v20 }
 0xb6a   : > { %1681 = vmatmul.msk.f32.vlgmr.msrb.gmra.mxu0 %vm497_vm1, %v2172_v32 }
 0xb6e   : > { %v1779_v21 = vpop.eup %1778 }
 0xb6f   : > { %v1347_v22 = vmul.f32 %v1779_v21, %v1775_v13 }
 0xb71   : > { %1383 = vmatpush.msrb.mxu1 %v1347_v22 }
 0xb72   : > { %1682 = vmatmul.msk.f32.vlgmr.msrb.gmra.mxu1 %vm497_vm1, %v2168_v31 }
 0xb83   : > { %v1414_v23 = vpop.f32.mrf.mxu3 }
 0xb84   : > { %1438 = vmatpush.msra.mxu0 %v1414_v23 }
 0xb8b   : > { %v1417_v24 = vpop.f32.mrf.mxu3 }
 0xb8c   : > { %1461 = vmatpush.msra.mxu1 %v1417_v24 }
 0xbe7   : > { %v1365_v25 = vpop.f32.mrf.mxu0 }
 0xbe8   : > { %1685 = vmatmul.msk.f32.vlgmr.msra.gmra.mxu0 %vm497_vm1, %v1365_v25 }
 0xbef   : > { %v1385_v26 = vpop.f32.mrf.mxu1 }
 0xbf0   : > { %1686 = vmatmul.msk.f32.vlgmr.msra.gmra.mxu1 %vm497_vm1, %v1385_v26 }
 0xc65   : > { %v1440_v30 = vpop.f32.mrf.mxu0 }
 0xc66   : > { %v1441_v32 = vadd.f32 %v1440_v30, %v1414_v23 }
 0xc68   : > { %v1470_v2 = vadd.f32 %v1468_v29, %v1441_v32 }
 0xc6a   : > { %v1472_v31 = vmul.f32 %v2060_v48, %v1470_v2  ;;  %v1490_v48 = vld [vmem:[%s2296_s12 + $0x18] sm:$0xff] }
 0xc6b   : > { %1527 = vmatpush.msrb.mxu2 %v1490_v48 }
 0xc6c   : > { %v1474_v33 = vmax.f32 %v1472_v31, 0.0 }
 0xc6d   : > { %v1463_v34 = vpop.f32.mrf.mxu1  ;;  %1528 = vmatpush.msrb.mxu2 %v1489_v40 }
 0xc6e   : > { %v1464_v36 = vadd.f32 %v1463_v34, %v1417_v24  ;;  %1478 = vrot.lane.b32.xlu2 %v1474_v33, %s1847_s20 }
 0xc70   : > { %v1471_v37 = vadd.f32 %v1468_v29, %v1464_v36 }
 0xc72   : > { %v1473_v35 = vmul.f32 %v2065_v55, %v1471_v37  ;;  %v1488_v55 = vld [vmem:[%s2296_s12 + $0x8] sm:$0xff] }
 0xc73   : > { %1529 = vmatpush.msrb.mxu2 %v1488_v55 }
 0xc74   : > { %v1475_v38 = vmax.f32 %v1473_v35, 0.0 }
 0xc76   : > { %1480 = vrot.lane.b32.xlu0 %v1475_v38, %s1847_s20  ;;  %1496 = vrot.lane.b32.xlu2 %v1985_v1, %s2315_s1  ;;  %s1634_s20 = sshll.u32 %s475_s18, 4 }
 0xc77   : > { %s477_s0 = scalar_lea.vmem [#allocation3], %s1634_s20 }
 0xc78   : > { %s1553_s28 = sshll.u32 %s477_s0, 4  ;;  %s1554_s28 = int_to_ptr.vmem [resolvable:$true] %s1553_s28 }
 0xc7e   : > { %1494 = vrot.lane.b32.xlu0 %v1983_v0, %s2315_s1  ;;  %v1487_v0 = vld [vmem:[%s2296_s12] sm:$0xff]  ;;  %s1848_s1 = smov 96  }
 0xc7f   : > { %1530 = vmatpush.msrb.mxu2 %v1487_v0 }
 0xcc8   : > { %v1479_v39 = vpop.permute.xlu2 %1478 }
 0xcc9   : > { %1485 = vst.msk [vmem:[#allocation2] sm:$0xff] %vm1484_vm8, %v1479_v39 }
 0xcd0   : > { %v1497_v41 = vpop.permute.xlu2 %1496  ;;  %v1492_v43 = vld [vmem:[#allocation2] sm:$0xff] }
 0xce8   : > { %v1481_v1 = vpop.permute.xlu0 %1480 }
 0xce9   : > { %1486 = vst.msk [vmem:[#allocation2 + $0x8] sm:$0xff] %vm1484_vm8, %v1481_v1 }
 0xcf0   : > { %v1495_v42 = vpop.permute.xlu0 %1494  ;;  %v1493_v44 = vld [vmem:[#allocation2 + $0x8] sm:$0xff] }
 0xcf1   : > { %v1500_v45 = vadd.f32 %v1495_v42, %v1492_v43  ;;  %v1501_v46 = vadd.f32 %v1497_v41, %v1493_v44 }
 0xcf3   : > { %1507 = vrot.lane.b32.xlu0 %v1500_v45, %s1848_s1  ;;  %1509 = vrot.lane.b32.xlu1 %v1501_v46, %s1848_s1  ;;  %s1555_s1 = sshll.u32 %s1552_s27, 4  ;;  %s1556_s1 = int_to_ptr.hbm [resolvable:$true] %s1555_s1 }
 0xcf4   : > { %s1794_s21 = sshra.s32 %s1556_s1, 4  ;;  %s1795_s21 = int_to_ptr.hbm [resolvable:$true] %s1794_s21 }
 0xcf5   : > { %s1796_s17 = scalar_lea.hbm %s1795_s21, 16  ;;  %p1801_p0 = scmp.lt.s32.totalorder %s1795_s21, %s2298_s14 }
 0xcf6   : > { %p1797_p11 = scmp.ne.s32.totalorder %s1795_s21, %s1796_s17  ;;  %p1802_p1 = scmp.lt.s32.totalorder %s1800_s26, %s1796_s17 }
 0xcf8   : > { %p1798_p12 = pnand %p1797_p11, %p1964_p5  ;;  %p1803_p2 = por %p1802_p1, %p1801_p0 }
 0xcfa   : > { %p1799_p13 = pneg %p1798_p12 }
 0xcfc   : > { %p1804_p3 = pnand %p1803_p2, %p1799_p13 }
 0xd65   : > { %v1508_v47 = vpop.permute.xlu0 %1507  ;;  %v1510_v49 = vpop.permute.xlu1 %1509 }
 0xd66   : > { %1687 = vmatmul.msk.f32.vlgmr.msrb.gmra.mxu2 %vm506_vm0, %v1508_v47 }
 0xd6e   : > { %1688 = vmatmul.msk.f32.gmra.mxu2 %vm506_vm0, %v1510_v49 }
 0xde9   : > { %v1532_v51 = vpop.f32.mrf.mxu2 }
 0xdea   : > { %v1533_v52 = vadd.f32 %v1743_v50, %v1532_v51 }
 0xdec   : > { %1538 = vst.msk [vmem:[%s477_s0] sm:$0xff] %vm506_vm0, %v1533_v52 }
 0xdf1   : > { %v1535_v53 = vpop.f32.mrf.mxu2 }
 0xdf2   : > { %v1536_v54 = vadd.f32 %v1743_v50, %v1535_v53 }
 0xdf4   : > { %1539 = vst.msk [vmem:[%s477_s0 + $0x8] sm:$0xff] %vm506_vm0, %v1536_v54 }
 0xdf5   : > { %1807 = shalt.err (!%p1804_p3)
}
 0xdf6   : > { %s1849_s18 = smov 128   ;;  %s1850_s0 = smov 8  }
 0xdf7   : > { %1696 = dma.vmem_to_hbm [thread:$0]  (%p1964_p5), %s1554_s28, 256, %s1556_s1, %s1541_s3, %s1849_s18, %s1849_s18, %s1850_s0  }
 0xdf8 PF: > { %p1702_p4 = scmp.ge.s32.totalorder %s1842_s16, 2  ;;  %s1570_s4 = sand.u32 1, %s1830_s29  }
 0xdf9   : > { %s1571_s27 = scalar_lea.sflag [#allocation4], %s1570_s4 }
 0xdfa   : > { %p1699_p7 = pnand %p1702_p4, %p1968_p6 }
 0xdfc   : > { %p1700_p8 = pneg %p1699_p7 }
 0xdfe   : > { %1825 = dma.done.wait (%p1700_p8), %s1571_s27, 256  }
 0xdff   : > { %1827 = vsyncadd (%p1700_p8), %s1571_s27, 4294967040  ;;  %p24_p9 = scmp.ge.s32.totalorder %s1951_s19, 4   ;;  %s2316_s29 = smov %s1834_s30 }
 0xe00   : > { %s2317_s30 = smov %s1838_s15  ;;  %s2318_s15 = smov %s1962_s22 }
 0xe01   : > { %s2319_s16 = smov %s1951_s19  ;;  %26 = sbr.rel (!%p24_p9) target bundleno = 9 (0x9), region = 114 }
 0xe06   :  { %1577 = vsyncpa [#allocation4], 1 }
 0xe07   :  { %1579 = vsyncpa [#allocation4 + $0x1], 1 }

</bundles_post_ra>
